<compile_context>
chip_gen: v7x
topology: tpu7x:2x2x1
jax: 0.10.0
libtpu: 0.0.40
codegen_flags: <defaults>
</compile_context>

<pallas_src>
import jax
import jax.numpy as jnp
import numpy as np
from jax.experimental import pallas as pl
from jax.experimental.pallas import tpu as pltpu

NEG_SLOPE = 0.01  # PyTorch nn.LeakyReLU default


def _leaky(x):
    return jnp.where(x > 0, x, NEG_SLOPE * x)


def _kernel(x_ref, w1_ref, b1_ref, w2_ref, b2_ref, ml_ref, mr_ref, sel_ref, o_ref):
    # x_ref:   (C_in,   BL)      batch-flattened activations (BL = B_blk * L)
    # w*_ref:  (3*C_out, C)      tap-stacked conv weights [k*C_out + c_out, c_in]
    # b*_ref:  (C_out, 1)
    # ml/mr:   (1, BL)           left/right-neighbor validity masks (0 at segment edges)
    # sel_ref: (BL, BL_out)      block-diagonal stride-2 column selector
    # o_ref:   (C_out, BL_out)
    c_out = o_ref.shape[0]

    x = x_ref[...]
    ml = ml_ref[...]
    mr = mr_ref[...]
    w1 = w1_ref[...]
    w2 = w2_ref[...]

    def conv3(inp, w):
        # 3-tap "same" conv along the flattened length axis.
        n_lane = inp.shape[1]
        left = pltpu.roll(inp, shift=1, axis=1) * ml            # inp[:, j-1], 0 at l==0
        right = pltpu.roll(inp, shift=n_lane - 1, axis=1) * mr  # inp[:, j+1], 0 at l==L-1
        return (jnp.dot(w[0:c_out], left, preferred_element_type=jnp.float32)
                + jnp.dot(w[c_out:2 * c_out], inp, preferred_element_type=jnp.float32)
                + jnp.dot(w[2 * c_out:3 * c_out], right, preferred_element_type=jnp.float32))

    # ---- Conv1 (stride 1, pad 1) + LeakyReLU ----
    y1 = _leaky(conv3(x, w1) + b1_ref[...])        # (C_out, BL)

    # ---- Conv2 (pad 1) at all positions, then hoisted stride-2 selection ----
    y2_full = conv3(y1, w2)                        # (C_out, BL)
    y2 = jnp.dot(y2_full, sel_ref[...], preferred_element_type=jnp.float32) + b2_ref[...]
    o_ref[...] = _leaky(y2)                        # (C_out, BL_out)


def _pick_batch_block(N, L, L_out):
    """Whole batch per step when small; otherwise a divisor giving lane-aligned blocks."""
    if N * L <= 4096:
        return N
    for d in range(N, 0, -1):
        if N % d == 0 and d * L <= 4096 and (d * L) % 128 == 0 and (d * L_out) % 128 == 0:
            return d
    return N


def contrastive_mlp_new(x, w1, b1, w2, b2):
    """x: (N, C_in, L) float32; weights follow PyTorch Conv1d layout (C_out, C_in, 3)."""
    N, C_in, L = x.shape
    C_out = w1.shape[0]
    L_out = (L + 2 * 1 - 3) // 2 + 1  # PyTorch conv1d: stride=2, pad=1, k=3

    B_blk = _pick_batch_block(N, L, L_out)
    G = N // B_blk
    BL = B_blk * L
    BLo = B_blk * L_out

    # Layout plumbing (host/XLA side): batch flattened into the lane axis.
    x2d = jnp.transpose(x, (1, 0, 2)).reshape(C_in, N * L)           # (C_in, N*L)
    w1_taps = jnp.transpose(w1, (2, 0, 1)).reshape(3 * C_out, C_in)  # [k*C_out + c_out, c_in]
    w2_taps = jnp.transpose(w2, (2, 0, 1)).reshape(3 * C_out, C_out)
    b1c = b1.reshape(C_out, 1)
    b2c = b2.reshape(C_out, 1)

    # Hoisted constants: boundary masks + block-diagonal stride-2 selector.
    l_idx = np.arange(BL) % L
    mask_l = jnp.asarray((l_idx != 0).astype(np.float32)[None, :])       # (1, BL)
    mask_r = jnp.asarray((l_idx != L - 1).astype(np.float32)[None, :])   # (1, BL)
    sel_np = np.zeros((BL, BLo), dtype=np.float32)
    for n in range(B_blk):
        for m in range(L_out):
            sel_np[n * L + 2 * m, n * L_out + m] = 1.0
    sel = jnp.asarray(sel_np)

    out2d = pl.pallas_call(
        _kernel,
        out_shape=jax.ShapeDtypeStruct((C_out, N * L_out), jnp.float32),
        grid_spec=pltpu.PrefetchScalarGridSpec(
            num_scalar_prefetch=0,
            grid=(G,),
            in_specs=[
                pl.BlockSpec((C_in, BL), lambda g: (0, g)),
                pl.BlockSpec((3 * C_out, C_in), lambda g: (0, 0)),
                pl.BlockSpec((C_out, 1), lambda g: (0, 0)),
                pl.BlockSpec((3 * C_out, C_out), lambda g: (0, 0)),
                pl.BlockSpec((C_out, 1), lambda g: (0, 0)),
                pl.BlockSpec((1, BL), lambda g: (0, 0)),
                pl.BlockSpec((1, BL), lambda g: (0, 0)),
                pl.BlockSpec((BL, BLo), lambda g: (0, 0)),
            ],
            out_specs=pl.BlockSpec((C_out, BLo), lambda g: (0, g)),
        ),
        compiler_params=pltpu.CompilerParams(
            dimension_semantics=("parallel",),
            vmem_limit_bytes=64 * 1024 * 1024,
        ),
    )(x2d, w1_taps, b1c, w2_taps, b2c, mask_l, mask_r, sel)

    # (C_out, N*L_out) -> (N, C_out, L_out)
    return jnp.transpose(out2d.reshape(C_out, N, L_out), (1, 0, 2))


def _ref_forward(x, w1, b1, w2, b2):
    """Pure-JAX reference matching PyTorch semantics."""
    dn = ("NCH", "OIH", "NCH")
    y = jax.lax.conv_general_dilated(x, w1, (1,), ((1, 1),), dimension_numbers=dn)
    y = _leaky(y + b1[None, :, None])
    y = jax.lax.conv_general_dilated(y, w2, (2,), ((1, 1),), dimension_numbers=dn)
    y = _leaky(y + b2[None, :, None])
    return y


if __name__ == "__main__":
    # Small shapes consistent with the module's forward.
    N, C_in, C_out, L = 2, 4, 8, 16

    key = jax.random.PRNGKey(0)
    kx, k1, k2, k3, k4 = jax.random.split(key, 5)
    x = jax.random.normal(kx, (N, C_in, L), dtype=jnp.float32)

    # Deterministic synthetic parameters (PyTorch Conv1d weight layout).
    w1 = jax.random.normal(k1, (C_out, C_in, 3), dtype=jnp.float32) * 0.2
    b1 = jax.random.normal(k2, (C_out,), dtype=jnp.float32) * 0.1
    w2 = jax.random.normal(k3, (C_out, C_out, 3), dtype=jnp.float32) * 0.2
    b2 = jax.random.normal(k4, (C_out,), dtype=jnp.float32) * 0.1

    out = contrastive_mlp_new(x, w1, b1, w2, b2)
    out = jax.block_until_ready(out)

    ref = jax.block_until_ready(_ref_forward(x, w1, b1, w2, b2))
    assert out.shape == (N, C_out, L // 2), out.shape
    np.testing.assert_allclose(np.asarray(out), np.asarray(ref), rtol=1e-5, atol=1e-5)

    print("KERNEL_OK")
</pallas_src>

<mosaic_0001>
module attributes {stable_mosaic.version = 11 : i64} {
  func.func @_kernel(%arg0: i32, %arg1: memref<4x32xf32, #tpu.memory_space<vmem>>, %arg2: memref<24x4xf32, #tpu.memory_space<vmem>>, %arg3: memref<8x1xf32, #tpu.memory_space<vmem>>, %arg4: memref<24x8xf32, #tpu.memory_space<vmem>>, %arg5: memref<8x1xf32, #tpu.memory_space<vmem>>, %arg6: memref<1x32xf32, #tpu.memory_space<vmem>>, %arg7: memref<1x32xf32, #tpu.memory_space<vmem>>, %arg8: memref<32x16xf32, #tpu.memory_space<vmem>>, %arg9: memref<8x16xf32, #tpu.memory_space<vmem>>) attributes {dimension_semantics = [#tpu.dimension_semantics<parallel>], iteration_bounds = array<i64: 1>, scalar_prefetch = 0 : i64, scratch_operands = 0 : i64, tpu.core_type = #tpu.core_type<tc>, window_params = [{transform_indices = @transform_0, window_bounds = array<i64: 4, 32>}, {pipeline_mode = #tpu.pipeline_mode<synchronous>, transform_indices = @transform_1, window_bounds = array<i64: 24, 4>}, {pipeline_mode = #tpu.pipeline_mode<synchronous>, transform_indices = @transform_2, window_bounds = array<i64: 8, 1>}, {pipeline_mode = #tpu.pipeline_mode<synchronous>, transform_indices = @transform_3, window_bounds = array<i64: 24, 8>}, {pipeline_mode = #tpu.pipeline_mode<synchronous>, transform_indices = @transform_4, window_bounds = array<i64: 8, 1>}, {pipeline_mode = #tpu.pipeline_mode<synchronous>, transform_indices = @transform_5, window_bounds = array<i64: 1, 32>}, {pipeline_mode = #tpu.pipeline_mode<synchronous>, transform_indices = @transform_6, window_bounds = array<i64: 1, 32>}, {pipeline_mode = #tpu.pipeline_mode<synchronous>, transform_indices = @transform_7, window_bounds = array<i64: 32, 16>}, {transform_indices = @transform_8, window_bounds = array<i64: 8, 16>}]} {
    %c0 = arith.constant 0 : index
    %c0_0 = arith.constant 0 : index
    %0 = vector.load %arg1[%c0, %c0_0] : memref<4x32xf32, #tpu.memory_space<vmem>>, vector<4x32xf32>
    %c0_1 = arith.constant 0 : index
    %c0_2 = arith.constant 0 : index
    %1 = vector.load %arg6[%c0_1, %c0_2] : memref<1x32xf32, #tpu.memory_space<vmem>>, vector<1x32xf32>
    %c0_3 = arith.constant 0 : index
    %c0_4 = arith.constant 0 : index
    %2 = vector.load %arg7[%c0_3, %c0_4] : memref<1x32xf32, #tpu.memory_space<vmem>>, vector<1x32xf32>
    %c0_5 = arith.constant 0 : index
    %c0_6 = arith.constant 0 : index
    %3 = vector.load %arg2[%c0_5, %c0_6] : memref<24x4xf32, #tpu.memory_space<vmem>>, vector<24x4xf32>
    %c0_7 = arith.constant 0 : index
    %c0_8 = arith.constant 0 : index
    %4 = vector.load %arg4[%c0_7, %c0_8] : memref<24x8xf32, #tpu.memory_space<vmem>>, vector<24x8xf32>
    %c1_i32 = arith.constant 1 : i32
    %5 = tpu.dynamic_rotate %0 by %c1_i32 dim 1 : vector<4x32xf32>, i32 -> vector<4x32xf32>
    %6 = vector.broadcast %1 : vector<1x32xf32> to vector<4x32xf32>
    %7 = arith.mulf %5, %6 : vector<4x32xf32>
    %c31_i32 = arith.constant 31 : i32
    %8 = tpu.dynamic_rotate %0 by %c31_i32 dim 1 : vector<4x32xf32>, i32 -> vector<4x32xf32>
    %9 = vector.broadcast %2 : vector<1x32xf32> to vector<4x32xf32>
    %10 = arith.mulf %8, %9 : vector<4x32xf32>
    %11 = vector.extract_strided_slice %3 {offsets = [0, 0], sizes = [8, 4], strides = [1, 1]} : vector<24x4xf32> to vector<8x4xf32>
    %cst = arith.constant dense<0.000000e+00> : vector<8x32xf32>
    %12 = tpu.matmul %11, %7, %cst {dimension_numbers = #tpu.dot_dimension_numbers<[1], [0], [0], [1], [0, 0, 1, 1], [], []>} : vector<8x4xf32>, vector<4x32xf32>, vector<8x32xf32> -> vector<8x32xf32>
    %13 = vector.extract_strided_slice %3 {offsets = [8, 0], sizes = [8, 4], strides = [1, 1]} : vector<24x4xf32> to vector<8x4xf32>
    %cst_9 = arith.constant dense<0.000000e+00> : vector<8x32xf32>
    %14 = tpu.matmul %13, %0, %cst_9 {dimension_numbers = #tpu.dot_dimension_numbers<[1], [0], [0], [1], [0, 0, 1, 1], [], []>} : vector<8x4xf32>, vector<4x32xf32>, vector<8x32xf32> -> vector<8x32xf32>
    %15 = arith.addf %12, %14 : vector<8x32xf32>
    %16 = vector.extract_strided_slice %3 {offsets = [16, 0], sizes = [8, 4], strides = [1, 1]} : vector<24x4xf32> to vector<8x4xf32>
    %cst_10 = arith.constant dense<0.000000e+00> : vector<8x32xf32>
    %17 = tpu.matmul %16, %10, %cst_10 {dimension_numbers = #tpu.dot_dimension_numbers<[1], [0], [0], [1], [0, 0, 1, 1], [], []>} : vector<8x4xf32>, vector<4x32xf32>, vector<8x32xf32> -> vector<8x32xf32>
    %18 = arith.addf %15, %17 : vector<8x32xf32>
    %c0_11 = arith.constant 0 : index
    %c0_12 = arith.constant 0 : index
    %19 = vector.load %arg3[%c0_11, %c0_12] : memref<8x1xf32, #tpu.memory_space<vmem>>, vector<8x1xf32>
    %20 = vector.broadcast %19 : vector<8x1xf32> to vector<8x32xf32>
    %21 = arith.addf %18, %20 : vector<8x32xf32>
    %cst_13 = arith.constant 0.000000e+00 : f32
    %22 = vector.broadcast %cst_13 : f32 to vector<8x32xf32>
    %23 = arith.cmpf ogt, %21, %22 : vector<8x32xf32>
    %cst_14 = arith.constant 0.00999999977 : f32
    %24 = vector.broadcast %cst_14 : f32 to vector<8x32xf32>
    %25 = arith.mulf %24, %21 : vector<8x32xf32>
    %26 = arith.select %23, %21, %25 : vector<8x32xi1>, vector<8x32xf32>
    %c1_i32_15 = arith.constant 1 : i32
    %27 = tpu.dynamic_rotate %26 by %c1_i32_15 dim 1 : vector<8x32xf32>, i32 -> vector<8x32xf32>
    %28 = vector.broadcast %1 : vector<1x32xf32> to vector<8x32xf32>
    %29 = arith.mulf %27, %28 : vector<8x32xf32>
    %c31_i32_16 = arith.constant 31 : i32
    %30 = tpu.dynamic_rotate %26 by %c31_i32_16 dim 1 : vector<8x32xf32>, i32 -> vector<8x32xf32>
    %31 = vector.broadcast %2 : vector<1x32xf32> to vector<8x32xf32>
    %32 = arith.mulf %30, %31 : vector<8x32xf32>
    %33 = vector.extract_strided_slice %4 {offsets = [0, 0], sizes = [8, 8], strides = [1, 1]} : vector<24x8xf32> to vector<8x8xf32>
    %cst_17 = arith.constant dense<0.000000e+00> : vector<8x32xf32>
    %34 = tpu.matmul %33, %29, %cst_17 {dimension_numbers = #tpu.dot_dimension_numbers<[1], [0], [0], [1], [0, 0, 1, 1], [], []>} : vector<8x8xf32>, vector<8x32xf32>, vector<8x32xf32> -> vector<8x32xf32>
    %35 = vector.extract_strided_slice %4 {offsets = [8, 0], sizes = [8, 8], strides = [1, 1]} : vector<24x8xf32> to vector<8x8xf32>
    %cst_18 = arith.constant dense<0.000000e+00> : vector<8x32xf32>
    %36 = tpu.matmul %35, %26, %cst_18 {dimension_numbers = #tpu.dot_dimension_numbers<[1], [0], [0], [1], [0, 0, 1, 1], [], []>} : vector<8x8xf32>, vector<8x32xf32>, vector<8x32xf32> -> vector<8x32xf32>
    %37 = arith.addf %34, %36 : vector<8x32xf32>
    %38 = vector.extract_strided_slice %4 {offsets = [16, 0], sizes = [8, 8], strides = [1, 1]} : vector<24x8xf32> to vector<8x8xf32>
    %cst_19 = arith.constant dense<0.000000e+00> : vector<8x32xf32>
    %39 = tpu.matmul %38, %32, %cst_19 {dimension_numbers = #tpu.dot_dimension_numbers<[1], [0], [0], [1], [0, 0, 1, 1], [], []>} : vector<8x8xf32>, vector<8x32xf32>, vector<8x32xf32> -> vector<8x32xf32>
    %40 = arith.addf %37, %39 : vector<8x32xf32>
    %c0_20 = arith.constant 0 : index
    %c0_21 = arith.constant 0 : index
    %41 = vector.load %arg8[%c0_20, %c0_21] : memref<32x16xf32, #tpu.memory_space<vmem>>, vector<32x16xf32>
    %cst_22 = arith.constant dense<0.000000e+00> : vector<8x16xf32>
    %42 = tpu.matmul %40, %41, %cst_22 {dimension_numbers = #tpu.dot_dimension_numbers<[1], [0], [0], [1], [0, 0, 1, 1], [], []>} : vector<8x32xf32>, vector<32x16xf32>, vector<8x16xf32> -> vector<8x16xf32>
    %c0_23 = arith.constant 0 : index
    %c0_24 = arith.constant 0 : index
    %43 = vector.load %arg5[%c0_23, %c0_24] : memref<8x1xf32, #tpu.memory_space<vmem>>, vector<8x1xf32>
    %44 = vector.broadcast %43 : vector<8x1xf32> to vector<8x16xf32>
    %45 = arith.addf %42, %44 : vector<8x16xf32>
    %cst_25 = arith.constant 0.000000e+00 : f32
    %46 = vector.broadcast %cst_25 : f32 to vector<8x16xf32>
    %47 = arith.cmpf ogt, %45, %46 : vector<8x16xf32>
    %cst_26 = arith.constant 0.00999999977 : f32
    %48 = vector.broadcast %cst_26 : f32 to vector<8x16xf32>
    %49 = arith.mulf %48, %45 : vector<8x16xf32>
    %50 = arith.select %47, %45, %49 : vector<8x16xi1>, vector<8x16xf32>
    %c0_27 = arith.constant 0 : index
    %c0_28 = arith.constant 0 : index
    %51 = vector.load %arg9[%c0_27, %c0_28] : memref<8x16xf32, #tpu.memory_space<vmem>>, vector<8x16xf32>
    tpu.vector_store %arg9[%c0_27, %c0_28], %50 {strides = array<i32>} : memref<8x16xf32, #tpu.memory_space<vmem>>, vector<8x16xf32>,
    return
  }
  func.func @transform_0(%arg0: i32) -> (i32, i32) {
    %c0_i32 = arith.constant 0 : i32
    %c0_i32_0 = arith.constant 0 : i32
    return %c0_i32, %arg0 : i32, i32
  }
  func.func @transform_1(%arg0: i32) -> (i32, i32) {
    %c0_i32 = arith.constant 0 : i32
    %c0_i32_0 = arith.constant 0 : i32
    %c0_i32_1 = arith.constant 0 : i32
    return %c0_i32, %c0_i32_0 : i32, i32
  }
  func.func @transform_2(%arg0: i32) -> (i32, i32) {
    %c0_i32 = arith.constant 0 : i32
    %c0_i32_0 = arith.constant 0 : i32
    %c0_i32_1 = arith.constant 0 : i32
    return %c0_i32, %c0_i32_0 : i32, i32
  }
  func.func @transform_3(%arg0: i32) -> (i32, i32) {
    %c0_i32 = arith.constant 0 : i32
    %c0_i32_0 = arith.constant 0 : i32
    %c0_i32_1 = arith.constant 0 : i32
    return %c0_i32, %c0_i32_0 : i32, i32
  }
  func.func @transform_4(%arg0: i32) -> (i32, i32) {
    %c0_i32 = arith.constant 0 : i32
    %c0_i32_0 = arith.constant 0 : i32
    %c0_i32_1 = arith.constant 0 : i32
    return %c0_i32, %c0_i32_0 : i32, i32
  }
  func.func @transform_5(%arg0: i32) -> (i32, i32) {
    %c0_i32 = arith.constant 0 : i32
    %c0_i32_0 = arith.constant 0 : i32
    %c0_i32_1 = arith.constant 0 : i32
    return %c0_i32, %c0_i32_0 : i32, i32
  }
  func.func @transform_6(%arg0: i32) -> (i32, i32) {
    %c0_i32 = arith.constant 0 : i32
    %c0_i32_0 = arith.constant 0 : i32
    %c0_i32_1 = arith.constant 0 : i32
    return %c0_i32, %c0_i32_0 : i32, i32
  }
  func.func @transform_7(%arg0: i32) -> (i32, i32) {
    %c0_i32 = arith.constant 0 : i32
    %c0_i32_0 = arith.constant 0 : i32
    %c0_i32_1 = arith.constant 0 : i32
    return %c0_i32, %c0_i32_0 : i32, i32
  }
  func.func @transform_8(%arg0: i32) -> (i32, i32) {
    %c0_i32 = arith.constant 0 : i32
    %c0_i32_0 = arith.constant 0 : i32
    return %c0_i32, %arg0 : i32, i32
  }
}

</mosaic_0001>

<bundles_post_ra>
// kernel: tpu_custom_call.1
= control target key start
LH: loop header
LB: loop body
LE: loop exit
PB: predicated region body
PF: predicated region fallthrough
CT: control target
= control target key end

     0   :  { %13 = vsyncpa [#allocation3], 0  ;;  %s1287_s0 = inlined_call_operand.hbm [shape: f32[4,32], index: 0, kind: input, shape index: {}]   ;;  %s1288_s1 = inlined_call_operand.hbm [shape: f32[24,4], index: 1, kind: input, shape index: {}]   ;;  %s1289_s2 = inlined_call_operand.hbm [shape: f32[8,1], index: 2, kind: input, shape index: {}]   ;;  %s1290_s3 = inlined_call_operand.hbm [shape: f32[24,8], index: 3, kind: input, shape index: {}]   ;;  %s1291_s4 = inlined_call_operand.hbm [shape: f32[8,1], index: 4, kind: input, shape index: {}]   ;;  %s1292_s5 = inlined_call_operand.hbm [shape: f32[1,32], index: 5, kind: input, shape index: {}]   ;;  %s1293_s6 = inlined_call_operand.hbm [shape: f32[1,32], index: 6, kind: input, shape index: {}]   ;;  %s1294_s7 = inlined_call_operand.hbm [shape: f32[32,16], index: 7, kind: input, shape index: {}]   ;;  %s1295_s8 = inlined_call_operand.hbm [shape: f32[8,16], index: 8, kind: output, shape index: {}]  }
   0x1   :  { %14 = vsyncpa [#allocation6], 0 }
   0x2   :  { %15 = vsyncpa [#allocation9], 0 }
   0x3   :  { %16 = vsyncpa [#allocation12], 0 }
   0x4   :  { %17 = vsyncpa [#allocation15], 0 }
   0x5   :  { %18 = vsyncpa [#allocation4], 0  ;;  %s1064_s27 = smov [#allocation5]   ;;  %s854_s9 = scalar_lea.hbm %s1288_s1, 384 }
   0x6   :  { %s34_s28 = sshll.u32 %s1064_s27, 4  ;;  %p855_p0 = scmp.ne.s32.totalorder %s1288_s1, %s854_s9  ;;  %s35_s28 = int_to_ptr.vmem [resolvable:$true] %s34_s28 }
   0x7   :  { %p858_p1 = scmp.lt.u32.totalorder %s854_s9, %s1288_s1 }
   0x9   :  { %p860_p2 = pnand %p858_p1, %p855_p0 }
   0xb   :  { %863 = shalt.err (!%p860_p2)
}
   0xc   :  { %s864_s14 = scalar_lea.vmem %s35_s28, 384  ;;  %p869_p4 = scmp.lt.s32.totalorder %s35_s28, %s35_s28 }
   0xd   :  { %p865_p3 = scmp.ne.s32.totalorder %s35_s28, %s864_s14  ;;  %p870_p5 = scmp.lt.s32.totalorder %s864_s14, %s864_s14 }
   0xf   :  { %p871_p6 = por %p870_p5, %p869_p4 }
  0x11   :  { %p872_p7 = pnand %p871_p6, %p865_p3 }
  0x13   :  { %875 = shalt.err (!%p872_p7)
}
  0x14   :  { %s1065_s15 = smov 128   ;;  %s1066_s16 = smov 8  }
  0x15   :  { %40 = dma.hbm_to_vmem [thread:$0]  %s1288_s1, 384, %s35_s28, [#allocation6], %s1065_s15, %s1065_s15, %s1066_s16  }
  0x16   :  { %s1067_s19 = smov [#allocation8]   ;;  %s1068_s21 = smov [#allocation11]  }
  0x17   :  { %s56_s20 = sshll.u32 %s1067_s19, 4  ;;  %s79_s22 = sshll.u32 %s1068_s21, 4  ;;  %s57_s20 = int_to_ptr.vmem [resolvable:$true] %s56_s20  ;;  %s80_s22 = int_to_ptr.vmem [resolvable:$true] %s79_s22 }
  0x18   :  { %s876_s25 = scalar_lea.hbm %s1290_s3, 384 }
  0x19   :  { %p877_p8 = scmp.ne.s32.totalorder %s1290_s3, %s876_s25  ;;  %p880_p9 = scmp.lt.u32.totalorder %s876_s25, %s1290_s3 }
  0x1b   :  { %p882_p10 = pnand %p880_p9, %p877_p8 }
  0x1d   :  { %885 = shalt.err (!%p882_p10)
}
  0x1e   :  { %s886_s1 = scalar_lea.vmem %s57_s20, 384  ;;  %p891_p12 = scmp.lt.s32.totalorder %s57_s20, %s57_s20 }
  0x1f   :  { %p887_p11 = scmp.ne.s32.totalorder %s57_s20, %s886_s1  ;;  %p892_p13 = scmp.lt.s32.totalorder %s886_s1, %s886_s1 }
  0x21   :  { %p893_p0 = por %p892_p13, %p891_p12 }
  0x23   :  { %p894_p1 = pnand %p893_p0, %p887_p11 }
  0x25   :  { %897 = shalt.err (!%p894_p1)
}
  0x26   :  { %62 = dma.hbm_to_vmem [thread:$0]  %s1290_s3, 384, %s57_s20, [#allocation9], %s1065_s15, %s1065_s15, %s1066_s16  }
  0x27   :  { %s898_s12 = scalar_lea.hbm %s1292_s5, 16 }
  0x28   :  { %p899_p2 = scmp.ne.s32.totalorder %s1292_s5, %s898_s12  ;;  %p902_p3 = scmp.lt.u32.totalorder %s898_s12, %s1292_s5 }
  0x2a   :  { %p904_p4 = pnand %p902_p3, %p899_p2 }
  0x2c   :  { %907 = shalt.err (!%p904_p4)
}
  0x2d   :  { %s908_s19 = scalar_lea.vmem %s80_s22, 16  ;;  %s912_s21 = scalar_lea.vmem %s80_s22, 32 }
  0x2e   :  { %p909_p5 = scmp.ne.s32.totalorder %s80_s22, %s908_s19  ;;  %p913_p6 = scmp.lt.s32.totalorder %s80_s22, %s80_s22 }
  0x2f   :  { %p914_p7 = scmp.lt.s32.totalorder %s912_s21, %s908_s19 }
  0x31   :  { %p915_p8 = por %p914_p7, %p913_p6 }
  0x33   :  { %p916_p9 = pnand %p915_p8, %p909_p5 }
  0x35   :  { %919 = shalt.err (!%p916_p9)
}
  0x36   :  { %82 = dma.hbm_to_vmem [thread:$0]  %s1292_s5, 16, %s80_s22, [#allocation12]  }
  0x37   :  { %s1069_s23 = smov [#allocation2]   ;;  %s1070_s25 = smov [#allocation7]  }
  0x38   :  { %s25_s24 = sshll.u32 %s1069_s23, 4  ;;  %s47_s26 = sshll.u32 %s1070_s25, 4  ;;  %s26_s24 = int_to_ptr.vmem [resolvable:$true] %s25_s24  ;;  %s48_s26 = int_to_ptr.vmem [resolvable:$true] %s47_s26 }
  0x39   :  { %s920_s30 = scalar_lea.hbm %s1287_s0, 64 }
  0x3a   :  { %p921_p10 = scmp.ne.s32.totalorder %s1287_s0, %s920_s30  ;;  %p924_p11 = scmp.lt.u32.totalorder %s920_s30, %s1287_s0 }
  0x3c   :  { %p926_p12 = pnand %p924_p11, %p921_p10 }
  0x3e   :  { %929 = shalt.err (!%p926_p12)
}
  0x3f   :  { %s930_s5 = scalar_lea.vmem %s26_s24, 64  ;;  %p935_p0 = scmp.lt.s32.totalorder %s26_s24, %s26_s24 }
  0x40   :  { %p931_p13 = scmp.ne.s32.totalorder %s26_s24, %s930_s5  ;;  %p936_p1 = scmp.lt.s32.totalorder %s930_s5, %s930_s5 }
  0x42   :  { %p937_p2 = por %p936_p1, %p935_p0 }
  0x44   :  { %p938_p3 = pnand %p937_p2, %p931_p13 }
  0x46   :  { %941 = shalt.err (!%p938_p3)
}
  0x47   :  { %28 = dma.hbm_to_vmem [thread:$0]  %s1287_s0, 64, %s26_s24, [#allocation3]  }
  0x48   :  { %s942_s14 = scalar_lea.hbm %s1289_s2, 128 }
  0x49   :  { %p943_p4 = scmp.ne.s32.totalorder %s1289_s2, %s942_s14  ;;  %p946_p5 = scmp.lt.u32.totalorder %s942_s14, %s1289_s2 }
  0x4b   :  { %p948_p6 = pnand %p946_p5, %p943_p4 }
  0x4d   :  { %951 = shalt.err (!%p948_p6)
}
  0x4e   :  { %s952_s3 = scalar_lea.vmem %s48_s26, 128  ;;  %p957_p8 = scmp.lt.s32.totalorder %s48_s26, %s48_s26 }
  0x4f   :  { %p953_p7 = scmp.ne.s32.totalorder %s48_s26, %s952_s3  ;;  %p958_p9 = scmp.lt.s32.totalorder %s952_s3, %s952_s3 }
  0x51   :  { %p959_p10 = por %p958_p9, %p957_p8 }
  0x53   :  { %p960_p11 = pnand %p959_p10, %p953_p7 }
  0x55   :  { %963 = shalt.err (!%p960_p11)
}
  0x56   :  { %50 = dma.hbm_to_vmem [thread:$0]  %s1289_s2, 128, %s48_s26, [#allocation6]  }
  0x57   :  { %s1071_s23 = smov [#allocation10]   ;;  %s1072_s25 = smov [#allocation13]  }
  0x58   :  { %s69_s24 = sshll.u32 %s1071_s23, 4  ;;  %s89_s27 = sshll.u32 %s1072_s25, 4  ;;  %s70_s24 = int_to_ptr.vmem [resolvable:$true] %s69_s24  ;;  %s90_s27 = int_to_ptr.vmem [resolvable:$true] %s89_s27 }
  0x59   :  { %s964_s1 = scalar_lea.hbm %s1291_s4, 128 }
  0x5a   :  { %p965_p12 = scmp.ne.s32.totalorder %s1291_s4, %s964_s1  ;;  %p968_p13 = scmp.lt.u32.totalorder %s964_s1, %s1291_s4 }
  0x5c   :  { %p970_p0 = pnand %p968_p13, %p965_p12 }
  0x5e   :  { %973 = shalt.err (!%p970_p0)
}
  0x5f   :  { %s974_s2 = scalar_lea.vmem %s70_s24, 128  ;;  %p979_p2 = scmp.lt.s32.totalorder %s70_s24, %s70_s24 }
  0x60   :  { %p975_p1 = scmp.ne.s32.totalorder %s70_s24, %s974_s2  ;;  %p980_p3 = scmp.lt.s32.totalorder %s974_s2, %s974_s2 }
  0x62   :  { %p981_p4 = por %p980_p3, %p979_p2 }
  0x64   :  { %p982_p5 = pnand %p981_p4, %p975_p1 }
  0x66   :  { %985 = shalt.err (!%p982_p5)
}
  0x67   :  { %72 = dma.hbm_to_vmem [thread:$0]  %s1291_s4, 128, %s70_s24, [#allocation9]  }
  0x68   :  { %s986_s13 = scalar_lea.hbm %s1293_s6, 16 }
  0x69   :  { %p987_p6 = scmp.ne.s32.totalorder %s1293_s6, %s986_s13  ;;  %p990_p7 = scmp.lt.u32.totalorder %s986_s13, %s1293_s6 }
  0x6b   :  { %p992_p8 = pnand %p990_p7, %p987_p6 }
  0x6d   :  { %995 = shalt.err (!%p992_p8)
}
  0x6e   :  { %s996_s21 = scalar_lea.vmem %s90_s27, 16  ;;  %s1000_s3 = scalar_lea.vmem %s90_s27, 32 }
  0x6f   :  { %p997_p9 = scmp.ne.s32.totalorder %s90_s27, %s996_s21  ;;  %p1001_p10 = scmp.lt.s32.totalorder %s90_s27, %s90_s27 }
  0x70   :  { %p1002_p11 = scmp.lt.s32.totalorder %s1000_s3, %s996_s21 }
  0x72   :  { %p1003_p12 = por %p1002_p11, %p1001_p10 }
  0x74   :  { %p1004_p13 = pnand %p1003_p12, %p997_p9 }
  0x76   :  { %1007 = shalt.err (!%p1004_p13)
}
  0x77   :  { %92 = dma.hbm_to_vmem [thread:$0]  %s1293_s6, 16, %s90_s27, [#allocation12]  }
  0x78   :  { %s1073_s20 = smov [#allocation14]   ;;  %s1008_s29 = scalar_lea.hbm %s1294_s7, 512 }
  0x79   :  { %s98_s23 = sshll.u32 %s1073_s20, 4  ;;  %p1009_p0 = scmp.ne.s32.totalorder %s1294_s7, %s1008_s29  ;;  %s99_s23 = int_to_ptr.vmem [resolvable:$true] %s98_s23 }
  0x7a   :  { %p1012_p1 = scmp.lt.u32.totalorder %s1008_s29, %s1294_s7 }
  0x7c   :  { %p1014_p2 = pnand %p1012_p1, %p1009_p0 }
  0x7e   :  { %1017 = shalt.err (!%p1014_p2)
}
  0x7f   :  { %s1018_s10 = scalar_lea.vmem %s99_s23, 512  ;;  %p1023_p4 = scmp.lt.s32.totalorder %s99_s23, %s99_s23 }
  0x80   :  { %p1019_p3 = scmp.ne.s32.totalorder %s99_s23, %s1018_s10  ;;  %p1024_p5 = scmp.lt.s32.totalorder %s1018_s10, %s1018_s10 }
  0x82   :  { %p1025_p6 = por %p1024_p5, %p1023_p4 }
  0x84   :  { %p1026_p7 = pnand %p1025_p6, %p1019_p3 }
  0x86   :  { %1029 = shalt.err (!%p1026_p7)
}
  0x87   :  { %104 = dma.hbm_to_vmem [thread:$0]  %s1294_s7, 512, %s99_s23, [#allocation15], %s1065_s15, %s1065_s15, %s1066_s16  }
  0x88   :  { %1052 = dma.done.wait [#allocation3], 64  }
  0x89   :  { %1053 = vsyncadd [#allocation3], 4294967232 }
  0x8a   :  { %1054 = dma.done.wait [#allocation6], 512  }
  0x8b   :  { %1055 = vsyncadd [#allocation6], 4294966784 }
  0x8c   :  { %1056 = dma.done.wait [#allocation9], 512  }
  0x8d   :  { %1057 = vsyncadd [#allocation9], 4294966784 }
  0x8e   :  { %1058 = dma.done.wait [#allocation12], 32  }
  0x8f   :  { %1059 = vsyncadd [#allocation12], 4294967264 }
  0x90   :  { %1060 = dma.done.wait [#allocation15], 512  }
  0x91   :  { %1061 = vsyncadd [#allocation15], 4294966784  ;;  %v129_v0 = vld [vmem:[#allocation2] sm:$0xf]  ;;  %v753_v1 = vld [vmem:[#allocation11] ss:$0 sm:$0xff] }
  0x92   :  { %s1074_s5 = smov 32   ;;  %s1075_s2 = smov 31   ;;  %v754_v2 = vld [vmem:[#allocation13] ss:$0 sm:$0xff]  ;;  %vm167_vm0 = vcmask 1043456   ;;  %v133_v3 = vld [vmem:[#allocation5 + $0x8] sm:$0xff] }
  0x93   :  { %139 = vrot.lane.b32.xlu0 %v129_v0, %s1074_s5  ;;  %150 = vrot.lane.b32.xlu1 %v753_v1, %s1075_s2  ;;  %s1076_s26 = smov 1   ;;  %vm163_vm1 = vcmask 31744   ;;  %v1077_v4 = vmov 0.0   ;;  %vm1078_vm2 = vmmov 0   ;;  %vm138_vm3 = vcmask 1047808   ;;  %s1080_s7 = smov 127  }
  0x94   :  { %782 = vmatprep.subr.mxu0 %v1077_v4  ;;  %784 = vmatprep.mubr.msk.f32.mxu0 %vm1078_vm2, %v1077_v4  ;;  %v1079_v8 = vmov 0   ;;  %s1081_s15 = smov 97   ;;  %v398_v14 = vld [vmem:[#allocation7] sm:$0xff]  ;;  %v132_v17 = vld [vmem:[#allocation5] sm:$0xff]  ;;  %v134_v18 = vld [vmem:[#allocation5 + $0x10] sm:$0xff]  ;;  %vm416_vm5 = vcmask 64512  }
  0x95   :  { %783 = vmatpush3.msk.msra.mxu0 %vm167_vm0, %v129_v0  ;;  %787 = vmatprep.subr.mxu1 %v1077_v4  ;;  %v136_v31 = vld [vmem:[#allocation8 + $0x8] sm:$0xff]  ;;  %v649_v38 = vld [vmem:[#allocation10] sm:$0xff]  ;;  %v1082_v42 = vmov 0.0|0.0   ;;  %v135_v46 = vld [vmem:[#allocation8] sm:$0xff]  ;;  %vm655_vm6 = vcmask 261120   ;;  %s1083_s16 = smov [#allocation16]  }
  0x96   :  { %785 = vmatmul.mubr.msk.f32.vlgmr.msra.gmra.mrb[0].mxu0 %vm163_vm1, %v133_v3  ;;  %792 = vmatprep.subr.mxu0 %v1077_v4  ;;  %v645_v39 = vld [vmem:[#allocation14] sm:$0xff]  ;;  %v646_v40 = vld [vmem:[#allocation14 + $0x8] sm:$0xff]  ;;  %v647_v41 = vld [vmem:[#allocation14 + $0x10] sm:$0xff]  ;;  %s740_s22 = sshll.u32 %s1083_s16, 4  ;;  %vm732_vm8 = vcmask 130048   ;;  %s741_s22 = int_to_ptr.vmem [resolvable:$true] %s740_s22 }
  0x97   :  { %159 = vrot.lane.b32.xlu1 %v754_v2, %s1076_s26  ;;  %789 = vmatprep.mubr.msk.f32.mxu1 %vm1078_vm2, %v1077_v4  ;;  %v824_v43 = vpack.c.bf16 %v646_v40, %v645_v39  ;;  %v648_v44 = vld [vmem:[#allocation14 + $0x18] sm:$0xff]  ;;  %v137_v49 = vld [vmem:[#allocation8 + $0x10] sm:$0xff]  ;;  %s1030_s11 = scalar_lea.vmem %s741_s22, 128  ;;  %p1035_p9 = scmp.lt.s32.totalorder %s741_s22, %s741_s22 }
  0x98   :  { %794 = vmatprep.mubr.msk.f32.mxu0 %vm1078_vm2, %v1077_v4  ;;  %853 = vset.pattern.permute.xlu0 %v1079_v8  ;;  %v827_v45 = vpack.c.bf16 %v648_v44, %v647_v41  ;;  %p1031_p8 = scmp.ne.s32.totalorder %s741_s22, %s1030_s11  ;;  %p1036_p10 = scmp.lt.s32.totalorder %s1030_s11, %s1030_s11 }
  0x9a   :  { %p1037_p11 = por %p1036_p10, %p1035_p9 }
  0x9c   :  { %p1038_p12 = pnand %p1037_p11, %p1031_p8 }
 0x105   :  { %v140_v5 = vpop.permute.xlu0 %139  ;;  %v151_v7 = vpop.permute.xlu1 %150 }
 0x106   :  { %v141_v6 = vsel %vm138_vm3, %v140_v5, %v129_v0 }
 0x107   :  { %142 = vrot.lane.b32.xlu0 %v141_v6, %s1074_s5 }
 0x109   :  { %v160_v9 = vpop.permute.xlu1 %159 }
 0x169   :  { %v237_v15 = vpop.f32.mrb[0].mxu0 }
 0x16a   :  { %v786_v16 = vpop.f32.mrb[1].mxu0 }
 0x179   :  { %v143_v10 = vpop.permute.xlu0 %142 }
 0x17a   :  { %v144_v11 = vsel %vm138_vm3, %v143_v10, %v129_v0 }
 0x17b   :  { %v153_v12 = vmul.f32 %v151_v7, %v144_v11  ;;  %v162_v13 = vmul.f32 %v160_v9, %v144_v11 }
 0x17d   :  { %320 = vrot.lane.b32.xlu1 %v162_v13, %s1080_s7  ;;  %242 = vrot.lane.b32.xlu0 %v153_v12, %s1081_s15 }
 0x181   :  { %401 = vperm.xlu0 %853, %v398_v14  }
 0x1ef   :  { %v321_v19 = vpop.permute.xlu1 %320  ;;  %v243_v20 = vpop.permute.xlu0 %242 }
 0x1f0   :  { %788 = vmatpush3.msk.msra.mxu1 %vm167_vm0, %v243_v20  ;;  %793 = vmatpush3.msk.msra.mxu0 %vm167_vm0, %v321_v19 }
 0x1f1   :  { %790 = vmatmul.mubr.msk.f32.vlgmr.msra.gmra.mrb[0].mxu1 %vm163_vm1, %v132_v17  ;;  %795 = vmatmul.mubr.msk.f32.vlgmr.msra.gmra.mrb[2].mxu0 %vm163_vm1, %v134_v18 }
 0x1f2   :  { %797 = vmatprep.subr.mxu1 %v1077_v4  ;;  %799 = vmatprep.mubr.msk.f32.mxu1 %vm1078_vm2, %v1077_v4 }
 0x1f3   :  { %820 = vmatprep.mubr.msk.f32.mxu0 %vm1078_vm2, %v1077_v4  ;;  %823 = vmatprep.subr.bf16.mxu0 %v1082_v42 }
 0x1f4   :  { %825 = vmatpush3.bf16.msra.mxu0 %v824_v43 }
 0x1f5   :  { %826 = vmatprep.subr.bf16.mxu0 %v1082_v42 }
 0x1f8   :  { %828 = vmatpush3.bf16.msra.mxu0 %v827_v45 }
 0x200   :  { %v402_v26 = vpop.permute.xlu0 %401 }
 0x2c4   :  { %v315_v21 = vpop.f32.mrb[0].mxu1  ;;  %v393_v22 = vpop.f32.mrb[2].mxu0 }
 0x2c5   :  { %v316_v23 = vadd.f32 %v315_v21, %v237_v15  ;;  %v791_v24 = vpop.f32.mrb[1].mxu1  ;;  %v796_v25 = vpop.f32.mrb[3].mxu0 }
 0x2c7   :  { %v397_v27 = vadd.f32 %v393_v22, %v316_v23 }
 0x2c9   :  { %v404_v28 = vadd.f32 %v402_v26, %v397_v27 }
 0x2cb   :  { %vm405_vm4 = vcmp.gt.f32.partialorder %v404_v28, 0.0  ;;  %v406_v29 = vmul.f32 0.01, %v404_v28 }
 0x2cd   :  { %v407_v30 = vsel %vm405_vm4, %v404_v28, %v406_v29 }
 0x2ce   :  { %408 = vrot.lane.b32.xlu1 %v407_v30, %s1074_s5  ;;  %798 = vmatpush3.msra.mxu1 %v407_v30 }
 0x2cf   :  { %802 = vmatprep.subr.mxu1 %v1077_v4  ;;  %800 = vmatmul.mubr.msk.f32.vlgmr.msra.gmra.mrb[2].mxu1 %vm416_vm5, %v136_v31 }
 0x2d0   :  { %804 = vmatprep.mubr.msk.f32.mxu1 %vm1078_vm2, %v1077_v4 }
 0x340   :  { %v409_v32 = vpop.permute.xlu1 %408 }
 0x341   :  { %v410_v33 = vsel %vm138_vm3, %v409_v32, %v407_v30 }
 0x342   :  { %411 = vrot.lane.b32.xlu1 %v410_v33, %s1074_s5 }
 0x3b4   :  { %v412_v34 = vpop.permute.xlu1 %411 }
 0x3b5   :  { %v413_v35 = vsel %vm138_vm3, %v412_v34, %v407_v30 }
 0x3b6   :  { %v414_v36 = vmul.f32 %v413_v35, %v151_v7  ;;  %v415_v37 = vmul.f32 %v413_v35, %v160_v9 }
 0x3b8   :  { %568 = vrot.lane.b32.xlu1 %v415_v37, %s1080_s7  ;;  %491 = vrot.lane.b32.xlu0 %v414_v36, %s1081_s15 }
 0x3bc   :  { %652 = vperm.xlu0 %853, %v649_v38  }
 0x42a   :  { %v492_v47 = vpop.permute.xlu0 %491  ;;  %v569_v48 = vpop.permute.xlu1 %568 }
 0x42b   :  { %803 = vmatpush3.msra.mxu1 %v492_v47 }
 0x42c   :  { %805 = vmatmul.mubr.msk.f32.vlgmr.msra.gmra.mrb[2].mxu1 %vm416_vm5, %v135_v46  ;;  %807 = vmatprep.subr.mxu1 %v1077_v4 }
 0x42d   :  { %808 = vmatpush3.msra.mxu1 %v569_v48  ;;  %809 = vmatprep.mubr.msk.f32.mxu1 %vm1078_vm2, %v1077_v4 }
 0x434   :  { %810 = vmatmul.mubr.msk.f32.vlgmr.msra.gmra.mrb[2].mxu1 %vm416_vm5, %v137_v49 }
 0x43b   :  { %v653_v52 = vpop.permute.xlu0 %652 }
 0x507   :  { %v640_v50 = vpop.f32.mrb[2].mxu1 }
 0x508   :  { %v811_v51 = vpop.f32.mrb[3].mxu1  ;;  %821 = vmatmul.mubr.msk.f32.vlgmr.msra.gmra.mrb[4].mxu0 %vm655_vm6, %v640_v50 }
 0x5db   :  { %v725_v53 = vpop.f32.mrb[4].mxu0 }
 0x5dc   :  { %v726_v54 = vadd.f32 %v725_v53, %v653_v52  ;;  %v822_v55 = vpop.f32.mrb[5].mxu0 }
 0x5de   :  { %vm729_vm7 = vcmp.gt.f32.partialorder %v726_v54, 0.0  ;;  %v730_v56 = vmul.f32 0.01, %v726_v54 }
 0x5e0   :  { %v731_v57 = vsel %vm729_vm7, %v726_v54, %v730_v56 }
 0x5e1   :  { %733 = vst.msk [vmem:[#allocation16] sm:$0xff] %vm732_vm8, %v731_v57 }
 0x5e2   :  { %1041 = shalt.err (!%p1038_p12)
}
 0x5e3   :  { %s1042_s14 = scalar_lea.hbm %s1295_s8, 128 }
 0x5e4   :  { %p1043_p13 = scmp.ne.s32.totalorder %s1295_s8, %s1042_s14  ;;  %p1046_p0 = scmp.lt.u32.totalorder %s1042_s14, %s1295_s8 }
 0x5e6   :  { %p1048_p1 = pnand %p1046_p0, %p1043_p13 }
 0x5e8   :  { %1051 = shalt.err (!%p1048_p1)
}
 0x5e9   :  { %743 = dma.vmem_to_hbm [thread:$0]  %s741_s22, 128, %s1295_s8, [#allocation4]  }
 0x5ea   :  { %1062 = dma.done.wait [#allocation4], 128  }
 0x5eb   :  { %1063 = vsyncadd [#allocation4], 4294967168 }
 0x5ec   :  { %747 = vsyncpa [#allocation3], 1 }
 0x5ed   :  { %748 = vsyncpa [#allocation6], 1 }
 0x5ee   :  { %749 = vsyncpa [#allocation9], 1 }
 0x5ef   :  { %750 = vsyncpa [#allocation12], 1 }
 0x5f0   :  { %751 = vsyncpa [#allocation15], 1 }
 0x5f1   :  { %752 = vsyncpa [#allocation4], 1 }

</bundles_post_ra>
